<compile_context>
chip_gen: v5e
topology: v5e:2x2
jax: 0.10.0
libtpu: 0.0.40
codegen_flags: <defaults>
</compile_context>

<pallas_src>
import jax
import jax.numpy as jnp
from jax import lax
from jax.experimental import pallas as pl
from jax.experimental.pallas import tpu as pltpu

# ------------------------- model dimensions (logical) ------------------------
C = 4            # image channels
IMG = 16         # image spatial size
D_IMG = C * IMG * IMG       # 1024 (already a multiple of 128)
S = 8            # question sequence length
VOCAB = 50       # token vocabulary
EMB = 32         # embedding dim
HID = 32         # fused hidden dim (im.out_shape)
OUT = 1          # head output (BCEWithLogitsLoss branch)

# ------------------------- padded (lane-dense) dims ---------------------------
LANE = 128
HPAD = LANE      # hidden padded to a full lane tile
EPAD = LANE      # embedding dim padded
VPAD = LANE      # vocab padded (rows >= VOCAB are zero -> used as "masked token")
MAX_TB = 512     # batch rows per grid step (512-row tiles ~ 85% of HBM roofline)
TB_ALIGN = 16    # bf16 output block: keep sublane dim a multiple of 16


def _round_up(v, m):
    return ((v + m - 1) // m) * m


def _choose_tb(b):
    """Batch rows per grid step: multiple of 16, capped at MAX_TB, and (when the
    batch allows it) chosen so the grid has >= 2 balanced steps for v7x megacore."""
    if b <= TB_ALIGN:
        return TB_ALIGN
    n_steps = max(2, -(-b // MAX_TB))          # at least 2 steps once b > 16
    tb = -(-b // n_steps)                      # ceil: balanced tiles
    return min(MAX_TB, _round_up(tb, TB_ALIGN))


# ------------------------------ Pallas kernel --------------------------------
def vqa_kernel(x_ref, qid_ref, len_ref, emb_ref, w_im_ref, w_tm_ref,
               w1_ref, w2_ref, bias_ref, out_ref):
    tb = x_ref.shape[0]
    ids = qid_ref[...]                         # (TB, S)   int32
    lens = len_ref[...]                        # (TB, 1)   int32
    bias = bias_ref[...]                       # (4, HPAD) f32: b_im, b_tm, b1, b2

    # ---- text branch: fused embedding-bag (length-masked mean pool) ----
    # Remap tokens at positions >= len to vocab slot VPAD-1 (zero embedding row),
    # then counts[b, v] = #{ s : ids_m[b, s] == v };  pooled = counts @ E / len.
    pos_iota = lax.broadcasted_iota(jnp.int32, (tb, S), 1)
    ids_m = jnp.where(pos_iota < lens, ids, VPAD - 1)
    vocab_iota = lax.broadcasted_iota(jnp.int32, (tb, VPAD), 1)
    counts = jnp.zeros((tb, VPAD), jnp.float32)
    for s in range(S):                         # S = 8, static unroll, 1 cmp + 1 add / step
        counts = counts + (vocab_iota == ids_m[:, s:s + 1]).astype(jnp.float32)
    pooled = jnp.dot(counts.astype(jnp.bfloat16), emb_ref[...],
                     preferred_element_type=jnp.float32)          # (TB, EPAD)
    inv_len = pl.reciprocal(jnp.maximum(lens.astype(jnp.float32), 1.0), approx=True)
    pooled = pooled * inv_len
    txt = jnp.tanh(jnp.dot(pooled.astype(jnp.bfloat16), w_tm_ref[...],
                           preferred_element_type=jnp.float32) + bias[1:2, :])

    # ---- image branch: Linear + ReLU (bf16 cast happens here, not in the wrapper) ----
    img = jnp.dot(x_ref[...].astype(jnp.bfloat16), w_im_ref[...],
                  preferred_element_type=jnp.float32) + bias[0:1, :]
    img = jnp.maximum(img, 0.0)

    # ---- fusion (core of VQAModel.forward): x = x * q ----
    fused = img * txt

    # ---- head: Linear + ReLU, Linear -> logits (lane 0 of padded output) ----
    h = jnp.dot(fused.astype(jnp.bfloat16), w1_ref[...],
                preferred_element_type=jnp.float32) + bias[2:3, :]
    h = jnp.maximum(h, 0.0)
    out = jnp.dot(h.astype(jnp.bfloat16), w2_ref[...],
                  preferred_element_type=jnp.float32) + bias[3:4, :]
    out_ref[...] = out.astype(out_ref.dtype)   # lane-dense bf16 store (TB, 128)


# ------------------------------ params / packing ------------------------------
def init_params(key):
    ks = jax.random.split(key, 6)

    def rnd(k, shape, scale):
        return scale * jax.random.normal(k, shape, jnp.float32)

    return {
        "embedding": rnd(ks[0], (VOCAB, EMB), 1.0),
        "w_im": rnd(ks[1], (D_IMG, HID), D_IMG ** -0.5),
        "b_im": rnd(ks[5], (HID,), 0.1),
        "w_tm": rnd(ks[2], (EMB, HID), EMB ** -0.5),
        "b_tm": jnp.zeros((HID,), jnp.float32),
        "w1": rnd(ks[3], (HID, HID), HID ** -0.5),
        "b1": jnp.zeros((HID,), jnp.float32),
        "w2": rnd(ks[4], (HID, OUT), HID ** -0.5),
        "b2": jnp.zeros((OUT,), jnp.float32),
    }


def pack_params(p):
    """One-time prep: zero-pad to lane-dense shapes, cast matmul operands to bf16,
    pack the four biases into a single (4, 128) f32 operand."""
    def pad2(a, r, c):
        return jnp.pad(a, ((0, r - a.shape[0]), (0, c - a.shape[1])))

    bias = jnp.zeros((4, HPAD), jnp.float32)
    bias = bias.at[0, :HID].set(p["b_im"])
    bias = bias.at[1, :HID].set(p["b_tm"])
    bias = bias.at[2, :HID].set(p["b1"])
    bias = bias.at[3, :OUT].set(p["b2"])
    return {
        "emb": pad2(p["embedding"], VPAD, EPAD).astype(jnp.bfloat16),
        "w_im": pad2(p["w_im"], D_IMG, HPAD).astype(jnp.bfloat16),
        "w_tm": pad2(p["w_tm"], EPAD, HPAD).astype(jnp.bfloat16),
        "w1": pad2(p["w1"], HPAD, HPAD).astype(jnp.bfloat16),
        "w2": pad2(p["w2"], HPAD, HPAD).astype(jnp.bfloat16),
        "bias": bias,
    }


# ------------------------------ wrapper / glue --------------------------------
@jax.jit
def vqa_forward(x, q_ids, lengths, packed):
    b = x.shape[0]
    tb = _choose_tb(b)

    # Glue only: flatten NCHW -> (B, C*H*W).  No wrapper-side cast/pad of x:
    # it streams into the kernel as f32 (single HBM read) and the ragged tail
    # is handled by a partial last block (row-independent ops, dropped rows).
    x_flat = x.reshape(b, D_IMG)
    qid = q_ids.astype(jnp.int32)
    lens = lengths.astype(jnp.int32).reshape(b, 1)

    stream = lambda i: (i, 0)                  # per-batch-tile operands
    pinned = lambda i: (0, 0)                  # VMEM-resident weights

    out = pl.pallas_call(
        vqa_kernel,
        out_shape=jax.ShapeDtypeStruct((b, HPAD), jnp.bfloat16),
        grid_spec=pltpu.PrefetchScalarGridSpec(
            num_scalar_prefetch=0,
            grid=(pl.cdiv(b, tb),),
            in_specs=[
                # TODO(synk): if the x DMA is still exposed on v5e at TB=512,
                # add pipeline_mode=pl.Buffered(3) to this spec.
                pl.BlockSpec((tb, D_IMG), stream),     # x (f32, cast in-kernel)
                pl.BlockSpec((tb, S), stream),         # q_ids (int32)
                pl.BlockSpec((tb, 1), stream),         # lengths (int32)
                pl.BlockSpec((VPAD, EPAD), pinned),    # embedding (bf16)
                pl.BlockSpec((D_IMG, HPAD), pinned),   # w_im (bf16)
                pl.BlockSpec((EPAD, HPAD), pinned),    # w_tm (bf16)
                pl.BlockSpec((HPAD, HPAD), pinned),    # w1 (bf16)
                pl.BlockSpec((HPAD, HPAD), pinned),    # w2 padded to 128 lanes (bf16)
                pl.BlockSpec((4, HPAD), pinned),       # packed biases (f32)
            ],
            out_specs=pl.BlockSpec((tb, HPAD), stream),
        ),
        compiler_params=pltpu.CompilerParams(
            dimension_semantics=("parallel",),         # megacore on v7x, no-op on v5e/v6e
        ),
    )(x_flat, qid, lens,
      packed["emb"], packed["w_im"], packed["w_tm"],
      packed["w1"], packed["w2"], packed["bias"])

    return out[:, :OUT].astype(jnp.float32)    # logits, shape (B, 1)


# ---------------------------- reference (pure JAX) ----------------------------
def vqa_reference(x, q_ids, lengths, params):
    bf = lambda a: a.astype(jnp.bfloat16).astype(jnp.float32)  # match bf16 weights
    b = x.shape[0]
    x_flat = bf(x.reshape(b, D_IMG))
    emb = bf(params["embedding"])[q_ids]                          # (B, S, EMB)
    pos = jnp.arange(S, dtype=jnp.int32)[None, :]
    mask = (pos < lengths[:, None]).astype(jnp.float32)[..., None]
    denom = jnp.maximum(lengths[:, None].astype(jnp.float32), 1.0)
    q_pool = (emb * mask).sum(axis=1) / denom
    img = jnp.maximum(x_flat @ bf(params["w_im"]) + params["b_im"][None, :], 0.0)
    txt = jnp.tanh(q_pool @ bf(params["w_tm"]) + params["b_tm"][None, :])
    h = img * txt
    h = jnp.maximum(h @ bf(params["w1"]) + params["b1"][None, :], 0.0)
    return h @ bf(params["w2"]) + params["b2"][None, :]


if __name__ == "__main__":
    key = jax.random.PRNGKey(0)
    k_param, k_img, k_q = jax.random.split(key, 3)

    params = init_params(k_param)
    packed = pack_params(params)

    # deterministic example inputs (small shapes per module spec)
    B = 2
    x = jax.random.normal(k_img, (B, C, IMG, IMG), jnp.float32)      # NCHW image
    q_ids = jax.random.randint(k_q, (B, S), 0, VOCAB, jnp.int32)     # token ids
    lengths = jnp.array([8, 5], dtype=jnp.int32)                     # question lengths

    logits = vqa_forward(x, q_ids, lengths, packed)
    jax.block_until_ready(logits)

    ref = vqa_reference(x, q_ids, lengths, params)
    assert logits.shape == (B, OUT)
    # bf16 matmul operands, bf16 intermediate activation casts, and bf16 output
    # writeback inside the kernel vs f32 activations in the reference -> loose tol
    assert jnp.allclose(logits, ref, atol=3e-2, rtol=3e-2), (logits, ref)
    print("KERNEL_OK")
</pallas_src>

<mosaic_0001>
module attributes {stable_mosaic.version = 11 : i64} {
  func.func @vqa_kernel(%arg0: i32, %arg1: memref<16x1024xf32, #tpu.memory_space<vmem>>, %arg2: memref<16x8xi32, #tpu.memory_space<vmem>>, %arg3: memref<16x1xi32, #tpu.memory_space<vmem>>, %arg4: memref<128x128xbf16, #tpu.memory_space<vmem>>, %arg5: memref<1024x128xbf16, #tpu.memory_space<vmem>>, %arg6: memref<128x128xbf16, #tpu.memory_space<vmem>>, %arg7: memref<128x128xbf16, #tpu.memory_space<vmem>>, %arg8: memref<128x128xbf16, #tpu.memory_space<vmem>>, %arg9: memref<4x128xf32, #tpu.memory_space<vmem>>, %arg10: memref<16x128xbf16, #tpu.memory_space<vmem>>) attributes {dimension_semantics = [#tpu.dimension_semantics<parallel>], iteration_bounds = array<i64: 1>, scalar_prefetch = 0 : i64, scratch_operands = 0 : i64, tpu.core_type = #tpu.core_type<tc>, window_params = [{transform_indices = @transform_0, window_bounds = array<i64: 16, 1024>}, {transform_indices = @transform_1, window_bounds = array<i64: 16, 8>}, {transform_indices = @transform_2, window_bounds = array<i64: 16, 1>}, {pipeline_mode = #tpu.pipeline_mode<synchronous>, transform_indices = @transform_3, window_bounds = array<i64: 128, 128>}, {pipeline_mode = #tpu.pipeline_mode<synchronous>, transform_indices = @transform_4, window_bounds = array<i64: 1024, 128>}, {pipeline_mode = #tpu.pipeline_mode<synchronous>, transform_indices = @transform_5, window_bounds = array<i64: 128, 128>}, {pipeline_mode = #tpu.pipeline_mode<synchronous>, transform_indices = @transform_6, window_bounds = array<i64: 128, 128>}, {pipeline_mode = #tpu.pipeline_mode<synchronous>, transform_indices = @transform_7, window_bounds = array<i64: 128, 128>}, {pipeline_mode = #tpu.pipeline_mode<synchronous>, transform_indices = @transform_8, window_bounds = array<i64: 4, 128>}, {transform_indices = @transform_9, window_bounds = array<i64: 16, 128>}]} {
    %c0 = arith.constant 0 : index
    %c0_0 = arith.constant 0 : index
    %0 = vector.load %arg2[%c0, %c0_0] : memref<16x8xi32, #tpu.memory_space<vmem>>, vector<16x8xi32>
    %c0_1 = arith.constant 0 : index
    %c0_2 = arith.constant 0 : index
    %1 = vector.load %arg3[%c0_1, %c0_2] : memref<16x1xi32, #tpu.memory_space<vmem>>, vector<16x1xi32>
    %c0_3 = arith.constant 0 : index
    %c0_4 = arith.constant 0 : index
    %2 = vector.load %arg9[%c0_3, %c0_4] : memref<4x128xf32, #tpu.memory_space<vmem>>, vector<4x128xf32>
    %3 = tpu.iota {dimensions = array<i32: 1>} : vector<16x8xi32>
    %4 = vector.broadcast %1 : vector<16x1xi32> to vector<16x8xi32>
    %5 = arith.cmpi slt, %3, %4 : vector<16x8xi32>
    %c127_i32 = arith.constant 127 : i32
    %6 = vector.broadcast %c127_i32 : i32 to vector<16x8xi32>
    %7 = arith.select %5, %0, %6 : vector<16x8xi1>, vector<16x8xi32>
    %8 = tpu.iota {dimensions = array<i32: 1>} : vector<16x128xi32>
    %cst = arith.constant 0.000000e+00 : f32
    %9 = vector.broadcast %cst : f32 to vector<16x128xf32>
    %10 = vector.extract_strided_slice %7 {offsets = [0, 0], sizes = [16, 1], strides = [1, 1]} : vector<16x8xi32> to vector<16x1xi32>
    %11 = vector.broadcast %10 : vector<16x1xi32> to vector<16x128xi32>
    %12 = arith.cmpi eq, %8, %11 : vector<16x128xi32>
    %13 = arith.extui %12 : vector<16x128xi1> to vector<16x128xi32>
    %14 = arith.sitofp %13 : vector<16x128xi32> to vector<16x128xf32>
    %15 = arith.addf %9, %14 : vector<16x128xf32>
    %16 = vector.extract_strided_slice %7 {offsets = [0, 1], sizes = [16, 1], strides = [1, 1]} : vector<16x8xi32> to vector<16x1xi32>
    %17 = vector.broadcast %16 : vector<16x1xi32> to vector<16x128xi32>
    %18 = arith.cmpi eq, %8, %17 : vector<16x128xi32>
    %19 = arith.extui %18 : vector<16x128xi1> to vector<16x128xi32>
    %20 = arith.sitofp %19 : vector<16x128xi32> to vector<16x128xf32>
    %21 = arith.addf %15, %20 : vector<16x128xf32>
    %22 = vector.extract_strided_slice %7 {offsets = [0, 2], sizes = [16, 1], strides = [1, 1]} : vector<16x8xi32> to vector<16x1xi32>
    %23 = vector.broadcast %22 : vector<16x1xi32> to vector<16x128xi32>
    %24 = arith.cmpi eq, %8, %23 : vector<16x128xi32>
    %25 = arith.extui %24 : vector<16x128xi1> to vector<16x128xi32>
    %26 = arith.sitofp %25 : vector<16x128xi32> to vector<16x128xf32>
    %27 = arith.addf %21, %26 : vector<16x128xf32>
    %28 = vector.extract_strided_slice %7 {offsets = [0, 3], sizes = [16, 1], strides = [1, 1]} : vector<16x8xi32> to vector<16x1xi32>
    %29 = vector.broadcast %28 : vector<16x1xi32> to vector<16x128xi32>
    %30 = arith.cmpi eq, %8, %29 : vector<16x128xi32>
    %31 = arith.extui %30 : vector<16x128xi1> to vector<16x128xi32>
    %32 = arith.sitofp %31 : vector<16x128xi32> to vector<16x128xf32>
    %33 = arith.addf %27, %32 : vector<16x128xf32>
    %34 = vector.extract_strided_slice %7 {offsets = [0, 4], sizes = [16, 1], strides = [1, 1]} : vector<16x8xi32> to vector<16x1xi32>
    %35 = vector.broadcast %34 : vector<16x1xi32> to vector<16x128xi32>
    %36 = arith.cmpi eq, %8, %35 : vector<16x128xi32>
    %37 = arith.extui %36 : vector<16x128xi1> to vector<16x128xi32>
    %38 = arith.sitofp %37 : vector<16x128xi32> to vector<16x128xf32>
    %39 = arith.addf %33, %38 : vector<16x128xf32>
    %40 = vector.extract_strided_slice %7 {offsets = [0, 5], sizes = [16, 1], strides = [1, 1]} : vector<16x8xi32> to vector<16x1xi32>
    %41 = vector.broadcast %40 : vector<16x1xi32> to vector<16x128xi32>
    %42 = arith.cmpi eq, %8, %41 : vector<16x128xi32>
    %43 = arith.extui %42 : vector<16x128xi1> to vector<16x128xi32>
    %44 = arith.sitofp %43 : vector<16x128xi32> to vector<16x128xf32>
    %45 = arith.addf %39, %44 : vector<16x128xf32>
    %46 = vector.extract_strided_slice %7 {offsets = [0, 6], sizes = [16, 1], strides = [1, 1]} : vector<16x8xi32> to vector<16x1xi32>
    %47 = vector.broadcast %46 : vector<16x1xi32> to vector<16x128xi32>
    %48 = arith.cmpi eq, %8, %47 : vector<16x128xi32>
    %49 = arith.extui %48 : vector<16x128xi1> to vector<16x128xi32>
    %50 = arith.sitofp %49 : vector<16x128xi32> to vector<16x128xf32>
    %51 = arith.addf %45, %50 : vector<16x128xf32>
    %52 = vector.extract_strided_slice %7 {offsets = [0, 7], sizes = [16, 1], strides = [1, 1]} : vector<16x8xi32> to vector<16x1xi32>
    %53 = vector.broadcast %52 : vector<16x1xi32> to vector<16x128xi32>
    %54 = arith.cmpi eq, %8, %53 : vector<16x128xi32>
    %55 = arith.extui %54 : vector<16x128xi1> to vector<16x128xi32>
    %56 = arith.sitofp %55 : vector<16x128xi32> to vector<16x128xf32>
    %57 = arith.addf %51, %56 : vector<16x128xf32>
    %58 = arith.truncf %57 : vector<16x128xf32> to vector<16x128xbf16>
    %c0_5 = arith.constant 0 : index
    %c0_6 = arith.constant 0 : index
    %59 = vector.load %arg4[%c0_5, %c0_6] : memref<128x128xbf16, #tpu.memory_space<vmem>>, vector<128x128xbf16>
    %cst_7 = arith.constant dense<0.000000e+00> : vector<16x128xf32>
    %60 = tpu.matmul %58, %59, %cst_7 {dimension_numbers = #tpu.dot_dimension_numbers<[1], [0], [0], [1], [0, 0, 1, 1], [], []>} : vector<16x128xbf16>, vector<128x128xbf16>, vector<16x128xf32> -> vector<16x128xf32>
    %61 = arith.sitofp %1 : vector<16x1xi32> to vector<16x1xf32>
    %cst_8 = arith.constant 1.000000e+00 : f32
    %62 = vector.broadcast %cst_8 : f32 to vector<16x1xf32>
    %63 = arith.maximumf %61, %62 : vector<16x1xf32>
    %64 = tpu.reciprocal %63 {approx = true} : vector<16x1xf32> -> vector<16x1xf32>
    %65 = vector.broadcast %64 : vector<16x1xf32> to vector<16x128xf32>
    %66 = arith.mulf %60, %65 : vector<16x128xf32>
    %67 = arith.truncf %66 : vector<16x128xf32> to vector<16x128xbf16>
    %c0_9 = arith.constant 0 : index
    %c0_10 = arith.constant 0 : index
    %68 = vector.load %arg6[%c0_9, %c0_10] : memref<128x128xbf16, #tpu.memory_space<vmem>>, vector<128x128xbf16>
    %cst_11 = arith.constant dense<0.000000e+00> : vector<16x128xf32>
    %69 = tpu.matmul %67, %68, %cst_11 {dimension_numbers = #tpu.dot_dimension_numbers<[1], [0], [0], [1], [0, 0, 1, 1], [], []>} : vector<16x128xbf16>, vector<128x128xbf16>, vector<16x128xf32> -> vector<16x128xf32>
    %70 = vector.extract_strided_slice %2 {offsets = [1, 0], sizes = [1, 128], strides = [1, 1]} : vector<4x128xf32> to vector<1x128xf32>
    %71 = vector.broadcast %70 : vector<1x128xf32> to vector<16x128xf32>
    %72 = arith.addf %69, %71 : vector<16x128xf32>
    %73 = math.tanh %72 : vector<16x128xf32>
    %c0_12 = arith.constant 0 : index
    %c0_13 = arith.constant 0 : index
    %74 = vector.load %arg1[%c0_12, %c0_13] : memref<16x1024xf32, #tpu.memory_space<vmem>>, vector<16x1024xf32>
    %75 = arith.truncf %74 : vector<16x1024xf32> to vector<16x1024xbf16>
    %c0_14 = arith.constant 0 : index
    %c0_15 = arith.constant 0 : index
    %76 = vector.load %arg5[%c0_14, %c0_15] : memref<1024x128xbf16, #tpu.memory_space<vmem>>, vector<1024x128xbf16>
    %cst_16 = arith.constant dense<0.000000e+00> : vector<16x128xf32>
    %77 = tpu.matmul %75, %76, %cst_16 {dimension_numbers = #tpu.dot_dimension_numbers<[1], [0], [0], [1], [0, 0, 1, 1], [], []>} : vector<16x1024xbf16>, vector<1024x128xbf16>, vector<16x128xf32> -> vector<16x128xf32>
    %78 = vector.extract_strided_slice %2 {offsets = [0, 0], sizes = [1, 128], strides = [1, 1]} : vector<4x128xf32> to vector<1x128xf32>
    %79 = vector.broadcast %78 : vector<1x128xf32> to vector<16x128xf32>
    %80 = arith.addf %77, %79 : vector<16x128xf32>
    %cst_17 = arith.constant 0.000000e+00 : f32
    %81 = vector.broadcast %cst_17 : f32 to vector<16x128xf32>
    %82 = arith.maximumf %80, %81 : vector<16x128xf32>
    %83 = arith.mulf %82, %73 : vector<16x128xf32>
    %84 = arith.truncf %83 : vector<16x128xf32> to vector<16x128xbf16>
    %c0_18 = arith.constant 0 : index
    %c0_19 = arith.constant 0 : index
    %85 = vector.load %arg7[%c0_18, %c0_19] : memref<128x128xbf16, #tpu.memory_space<vmem>>, vector<128x128xbf16>
    %cst_20 = arith.constant dense<0.000000e+00> : vector<16x128xf32>
    %86 = tpu.matmul %84, %85, %cst_20 {dimension_numbers = #tpu.dot_dimension_numbers<[1], [0], [0], [1], [0, 0, 1, 1], [], []>} : vector<16x128xbf16>, vector<128x128xbf16>, vector<16x128xf32> -> vector<16x128xf32>
    %87 = vector.extract_strided_slice %2 {offsets = [2, 0], sizes = [1, 128], strides = [1, 1]} : vector<4x128xf32> to vector<1x128xf32>
    %88 = vector.broadcast %87 : vector<1x128xf32> to vector<16x128xf32>
    %89 = arith.addf %86, %88 : vector<16x128xf32>
    %cst_21 = arith.constant 0.000000e+00 : f32
    %90 = vector.broadcast %cst_21 : f32 to vector<16x128xf32>
    %91 = arith.maximumf %89, %90 : vector<16x128xf32>
    %92 = arith.truncf %91 : vector<16x128xf32> to vector<16x128xbf16>
    %c0_22 = arith.constant 0 : index
    %c0_23 = arith.constant 0 : index
    %93 = vector.load %arg8[%c0_22, %c0_23] : memref<128x128xbf16, #tpu.memory_space<vmem>>, vector<128x128xbf16>
    %cst_24 = arith.constant dense<0.000000e+00> : vector<16x128xf32>
    %94 = tpu.matmul %92, %93, %cst_24 {dimension_numbers = #tpu.dot_dimension_numbers<[1], [0], [0], [1], [0, 0, 1, 1], [], []>} : vector<16x128xbf16>, vector<128x128xbf16>, vector<16x128xf32> -> vector<16x128xf32>
    %95 = vector.extract_strided_slice %2 {offsets = [3, 0], sizes = [1, 128], strides = [1, 1]} : vector<4x128xf32> to vector<1x128xf32>
    %96 = vector.broadcast %95 : vector<1x128xf32> to vector<16x128xf32>
    %97 = arith.addf %94, %96 : vector<16x128xf32>
    %98 = arith.truncf %97 : vector<16x128xf32> to vector<16x128xbf16>
    %c0_25 = arith.constant 0 : index
    %c0_26 = arith.constant 0 : index
    %99 = vector.load %arg10[%c0_25, %c0_26] : memref<16x128xbf16, #tpu.memory_space<vmem>>, vector<16x128xbf16>
    tpu.vector_store %arg10[%c0_25, %c0_26], %98 {strides = array<i32>} : memref<16x128xbf16, #tpu.memory_space<vmem>>, vector<16x128xbf16>,
    return
  }
  func.func @transform_0(%arg0: i32) -> (i32, i32) {
    %c0_i32 = arith.constant 0 : i32
    %c0_i32_0 = arith.constant 0 : i32
    return %arg0, %c0_i32 : i32, i32
  }
  func.func @transform_1(%arg0: i32) -> (i32, i32) {
    %c0_i32 = arith.constant 0 : i32
    %c0_i32_0 = arith.constant 0 : i32
    return %arg0, %c0_i32 : i32, i32
  }
  func.func @transform_2(%arg0: i32) -> (i32, i32) {
    %c0_i32 = arith.constant 0 : i32
    %c0_i32_0 = arith.constant 0 : i32
    return %arg0, %c0_i32 : i32, i32
  }
  func.func @transform_3(%arg0: i32) -> (i32, i32) {
    %c0_i32 = arith.constant 0 : i32
    %c0_i32_0 = arith.constant 0 : i32
    %c0_i32_1 = arith.constant 0 : i32
    return %c0_i32, %c0_i32_0 : i32, i32
  }
  func.func @transform_4(%arg0: i32) -> (i32, i32) {
    %c0_i32 = arith.constant 0 : i32
    %c0_i32_0 = arith.constant 0 : i32
    %c0_i32_1 = arith.constant 0 : i32
    return %c0_i32, %c0_i32_0 : i32, i32
  }
  func.func @transform_5(%arg0: i32) -> (i32, i32) {
    %c0_i32 = arith.constant 0 : i32
    %c0_i32_0 = arith.constant 0 : i32
    %c0_i32_1 = arith.constant 0 : i32
    return %c0_i32, %c0_i32_0 : i32, i32
  }
  func.func @transform_6(%arg0: i32) -> (i32, i32) {
    %c0_i32 = arith.constant 0 : i32
    %c0_i32_0 = arith.constant 0 : i32
    %c0_i32_1 = arith.constant 0 : i32
    return %c0_i32, %c0_i32_0 : i32, i32
  }
  func.func @transform_7(%arg0: i32) -> (i32, i32) {
    %c0_i32 = arith.constant 0 : i32
    %c0_i32_0 = arith.constant 0 : i32
    %c0_i32_1 = arith.constant 0 : i32
    return %c0_i32, %c0_i32_0 : i32, i32
  }
  func.func @transform_8(%arg0: i32) -> (i32, i32) {
    %c0_i32 = arith.constant 0 : i32
    %c0_i32_0 = arith.constant 0 : i32
    %c0_i32_1 = arith.constant 0 : i32
    return %c0_i32, %c0_i32_0 : i32, i32
  }
  func.func @transform_9(%arg0: i32) -> (i32, i32) {
    %c0_i32 = arith.constant 0 : i32
    %c0_i32_0 = arith.constant 0 : i32
    return %arg0, %c0_i32 : i32, i32
  }
}

</mosaic_0001>

<bundles_post_ra>
// kernel: vqa_forward.1
= control target key start
LH: loop header
LB: loop body
LE: loop exit
PB: predicated region body
PF: predicated region fallthrough
CT: control target
= control target key end

     0   :  { %14 = vsyncpa [#allocation3], 0  ;;  %s2221_s0 = inlined_call_operand.vmem [shape: f32[2,1024], index: 0, kind: input, shape index: {}]   ;;  %s2222_s1 = inlined_call_operand.vmem [shape: s32[2,8], index: 1, kind: input, shape index: {}]   ;;  %s2223_s2 = inlined_call_operand.vmem [shape: s32[2,1], index: 2, kind: input, shape index: {}]   ;;  %s2224_s3 = inlined_call_operand.vmem [shape: bf16[128,128], index: 3, kind: input, shape index: {}]   ;;  %s2225_s4 = inlined_call_operand.hbm [shape: bf16[1024,128], index: 4, kind: input, shape index: {}]   ;;  %s2226_s5 = inlined_call_operand.vmem [shape: bf16[128,128], index: 5, kind: input, shape index: {}]   ;;  %s2227_s6 = inlined_call_operand.hbm [shape: bf16[128,128], index: 6, kind: input, shape index: {}]   ;;  %s2228_s7 = inlined_call_operand.hbm [shape: bf16[128,128], index: 7, kind: input, shape index: {}]   ;;  %s2229_s8 = inlined_call_operand.vmem [shape: f32[4,128], index: 8, kind: input, shape index: {}]   ;;  %s2230_s9 = inlined_call_operand.vmem [shape: bf16[2,128], index: 9, kind: output, shape index: {}]  }
   0x1   :  { %15 = vsyncpa [#allocation5], 0  ;;  %s43_s11 = sshll.u32 %s2227_s6, 4  ;;  %s1978_s12 = smov [#allocation4]   ;;  %s44_s11 = int_to_ptr.hbm [resolvable:$true] %s43_s11 }
   0x2   :  { %s45_s13 = sshll.u32 %s1978_s12, 4  ;;  %s28_s16 = sshll.u32 %s2225_s4, 4  ;;  %s46_s13 = int_to_ptr.vmem [resolvable:$true] %s45_s13  ;;  %s29_s16 = int_to_ptr.hbm [resolvable:$true] %s28_s16 }
   0x3   :  { %s1979_s17 = smov 64   ;;  %s1980_s18 = smov 4  }
   0x4   :  { %51 = dma.hbm_to_vmem [thread:$0]  %s44_s11, 1024, %s46_s13, [#allocation5], %s1979_s17, %s1979_s17, %s1980_s18  }
   0x5   :  { %s1981_s19 = smov [#allocation2]   ;;  %s56_s23 = sshll.u32 %s2228_s7, 4  ;;  %s57_s23 = int_to_ptr.hbm [resolvable:$true] %s56_s23 }
   0x6   :  { %s30_s20 = sshll.u32 %s1981_s19, 4  ;;  %s1982_s6 = smov [#allocation6]   ;;  %s31_s20 = int_to_ptr.vmem [resolvable:$true] %s30_s20 }
   0x7   :  { %36 = dma.hbm_to_vmem [thread:$0]  %s29_s16, 8192, %s31_s20, [#allocation3], %s1979_s17, %s1979_s17, %s1980_s18  }
   0x8   :  { %s58_s24 = sshll.u32 %s1982_s6, 4  ;;  %s59_s24 = int_to_ptr.vmem [resolvable:$true] %s58_s24 }
   0x9   :  { %64 = dma.hbm_to_vmem [thread:$0]  %s57_s23, 1024, %s59_s24, [#allocation5], %s1979_s17, %s1979_s17, %s1980_s18  }
   0xa   :  { %1974 = dma.done.wait [#allocation3], 8192  }
   0xb   :  { %1975 = vsyncadd [#allocation3], 4294959104 }
   0xc   :  { %1976 = dma.done.wait [#allocation5], 2048  }
   0xd   :  { %1977 = vsyncadd [#allocation5], 4294965248  ;;  %v1983_v0 = vmov 0   ;;  %v81_v1 = vld [vmem:[%s2223_s2] sm:$0xff]  ;;  %v82_v2 = vld [vmem:[%s2223_s2 + $0x8] sm:$0xff]  ;;  %v1984_v3 = vmov 1   ;;  %v84_v5 = vlaneseq }
   0xe   :  { %1876 = vset.pattern.permute.xlu0 %v1983_v0  ;;  %1877 = vset.pattern.permute.xlu1 %v1983_v0  ;;  %v1985_v4 = vmov 2   ;;  %v79_v7 = vld [vmem:[%s2222_s1] sm:$0xff]  ;;  %v80_v10 = vld [vmem:[%s2222_s1 + $0x8] sm:$0xff]  ;;  %v1986_v13 = vmov 4   ;;  %v1987_v14 = vmov 3   ;;  %v1988_v15 = vmov 7  }
   0xf   :  { %87 = vperm.xlu0 %1876, %v81_v1   ;;  %1878 = vset.pattern.permute.xlu2 %v1984_v3  ;;  %v2059_v6 = vand.u32 127, %v84_v5  ;;  %v1989_v16 = vmov 5   ;;  %v287_v17 = vcvt.s32.f32 %v81_v1  ;;  %v1990_v19 = vmov 6   ;;  %v1773_v24 = vld [vmem:[%s2224_s3 + $0x38] sm:$0xff]  ;;  %v1772_v26 = vld [vmem:[%s2224_s3 + $0x30] sm:$0xff]  ;;  %v1771_v28 = vld [vmem:[%s2224_s3 + $0x28] sm:$0xff] }
  0x10   :  { %v288_v20 = vcvt.s32.f32 %v82_v2  ;;  %273 = vmatpush.bf16.msra.mxu0 %v1773_v24  ;;  %v1770_v29 = vld [vmem:[%s2224_s3 + $0x20] sm:$0xff]  ;;  %v1769_v32 = vld [vmem:[%s2224_s3 + $0x18] sm:$0xff]  ;;  %v1768_v33 = vld [vmem:[%s2224_s3 + $0x10] sm:$0xff]  ;;  %v1991_v48 = vmov 0.0  }
  0x11   :  { %v289_v18 = vmax.f32 %v287_v17, 1.0  ;;  %v1767_v36 = vld [vmem:[%s2224_s3 + $0x8] sm:$0xff]  ;;  %v1766_v37 = vld [vmem:[%s2224_s3] sm:$0xff]  ;;  %v1781_v40 = vld [vmem:[%s2226_s5 + $0x38] sm:$0xff] }
  0x12   :  { %v290_v21 = vmax.f32 %v288_v20, 1.0  ;;  %v1789_v42 = vld [vmem:[#allocation2 + $0x38] sm:$0xff]  ;;  %371 = vmatpush.bf16.msra.mxu1 %v1781_v40  ;;  %v1780_v44 = vld [vmem:[%s2226_s5 + $0x30] sm:$0xff]  ;;  %v1788_v45 = vld [vmem:[#allocation2 + $0x30] sm:$0xff] }
  0x13   :  { %1894 = vrcp.f32 %v289_v18  ;;  %v1797_v43 = vld [vmem:[#allocation2 + $0x78] sm:$0xff]  ;;  %995 = vmatpush.bf16.msra.mxu2 %v1789_v42  ;;  %v1796_v46 = vld [vmem:[#allocation2 + $0x70] sm:$0xff]  ;;  %v1779_v51 = vld [vmem:[%s2226_s5 + $0x28] sm:$0xff] }
  0x14   :  { %1896 = vrcp.f32 %v290_v21  ;;  %274 = vmatpush.bf16.msra.mxu0 %v1772_v26  ;;  %1009 = vmatpush.bf16.msra.mxu3 %v1797_v43  ;;  %v1805_v47 = vld [vmem:[#allocation2 + $0xb8] sm:$0xff]  ;;  %v1804_v50 = vld [vmem:[#allocation2 + $0xb0] sm:$0xff]  ;;  %v1787_v55 = vld [vmem:[#allocation2 + $0x28] sm:$0xff] }
  0x15   :  { %v1795_v56 = vld [vmem:[#allocation2 + $0x68] sm:$0xff]  ;;  %v1778_v63 = vld [vmem:[%s2226_s5 + $0x20] sm:$0xff]  ;;  %v1786_v3 = vld [vmem:[#allocation2 + $0x20] sm:$0xff] }
  0x16   :  { %372 = vmatpush.bf16.msra.mxu1 %v1780_v44  ;;  %v1803_v61 = vld [vmem:[#allocation2 + $0xa8] sm:$0xff]  ;;  %v1801_v17 = vld [vmem:[#allocation2 + $0x98] sm:$0xff]  ;;  %v1792_v24 = vld [vmem:[#allocation2 + $0x50] sm:$0xff] }
  0x17   :  { %90 = vperm.xlu0 %1876, %v82_v2   ;;  %996 = vmatpush.bf16.msra.mxu2 %v1788_v45  ;;  %v1774_v40 = vld [vmem:[%s2226_s5] sm:$0xff]  ;;  %v1782_v44 = vld [vmem:[#allocation2] sm:$0xff] }
  0x18   :  { %275 = vmatpush.bf16.msra.mxu0 %v1771_v28  ;;  %1010 = vmatpush.bf16.msra.mxu3 %v1796_v46  ;;  %v1813_v43 = vld [vmem:[#allocation2 + $0xf8] sm:$0xff] }
  0x19   :  { %v1895_v22 = vpop.eup %1894 }
  0x1a   :  { %v1897_v23 = vpop.eup %1896  ;;  %373 = vmatpush.bf16.msra.mxu1 %v1779_v51  ;;  %v1812_v51 = vld [vmem:[#allocation2 + $0xf0] sm:$0xff] }
  0x1b   :  { %997 = vmatpush.bf16.msra.mxu2 %v1787_v55  ;;  %v387_v55 = vld [vmem:[%s2221_s0] sm:$0xff] }
  0x1c   :  { %276 = vmatpush.bf16.msra.mxu0 %v1770_v29  ;;  %1011 = vmatpush.bf16.msra.mxu3 %v1795_v56  ;;  %v1800_v29 = vld [vmem:[#allocation2 + $0x90] sm:$0xff]  ;;  %v389_v56 = vld [vmem:[%s2221_s0 + $0x10] sm:$0xff]  ;;  %419 = vst [vmem:[#allocation1] ss:$4 sm:$0xff] %v387_v55 }
  0x1d   :  { %421 = vst [vmem:[#allocation1 + $0x1] ss:$4 sm:$0xff] %v389_v56 }
  0x1e   :  { %374 = vmatpush.bf16.msra.mxu1 %v1778_v63  ;;  %v1827_v63 = vld [vmem:[#allocation2 + $0x168] sm:$0xff] }
  0x1f   :  { %1879 = vset.pattern.permute.xlu0 %v1985_v4  ;;  %998 = vmatpush.bf16.msra.mxu2 %v1786_v3  ;;  %v1818_v3 = vld [vmem:[#allocation2 + $0x120] sm:$0xff] }
  0x20   :  { %277 = vmatpush.bf16.msra.mxu0 %v1769_v32  ;;  %v1775_v32 = vld [vmem:[%s2226_s5 + $0x8] sm:$0xff] }
  0x24   :  { %278 = vmatpush.bf16.msra.mxu0 %v1768_v33  ;;  %v1783_v33 = vld [vmem:[#allocation2 + $0x8] sm:$0xff] }
  0x28   :  { %279 = vmatpush.bf16.msra.mxu0 %v1767_v36 }
  0x2c   :  { %280 = vmatpush.bf16.msra.mxu0 %v1766_v37 }
  0x30   :  { %1023 = vmatpush.bf16.msrb.mxu0 %v1805_v47  ;;  %v1821_v47 = vld [vmem:[#allocation2 + $0x138] sm:$0xff] }
  0x34   :  { %1024 = vmatpush.bf16.msrb.mxu0 %v1804_v50 }
  0x38   :  { %1025 = vmatpush.bf16.msrb.mxu0 %v1803_v61  ;;  %v395_v61 = vld [vmem:[%s2221_s0 + $0x40] sm:$0xff] }
  0x81   :  { %v88_v8 = vpop.permute.xlu0 %87 }
  0x82   :  { %vm92_vm0 = vcmp.lt.s32.totalorder %v2059_v6, %v88_v8  ;;  %v1802_v8 = vld [vmem:[#allocation2 + $0xa0] sm:$0xff] }
  0x83   :  { %v94_v9 = vsel %vm92_vm0, %v79_v7, 127  ;;  %1026 = vmatpush.bf16.msrb.mxu0 %v1802_v8  ;;  %v399_v8 = vld [vmem:[%s2221_s0 + $0x60] sm:$0xff] }
  0x84   :  { %125 = vperm.xlu0 %1879, %v94_v9   ;;  %111 = vperm.xlu2 %1878, %v94_v9  }
  0x85   :  { %97 = vperm.xlu1 %1877, %v94_v9  }
  0x87   :  { %1027 = vmatpush.bf16.msrb.mxu0 %v1801_v17  ;;  %v392_v17 = vld [vmem:[%s2221_s0 + $0x28] sm:$0xff] }
  0x88   :  { %431 = vst [vmem:[#allocation1 + $0x22] ss:$4 sm:$0xff] %v392_v17  ;;  %v2212_v17 = vld [vmem:[%s2229_s8] sm:$0xf] }
  0x89   :  { %v91_v11 = vpop.permute.xlu0 %90 }
  0x8a   :  { %vm93_vm1 = vcmp.lt.s32.totalorder %v2059_v6, %v91_v11 }
  0x8b   :  { %v95_v12 = vsel %vm93_vm1, %v80_v10, 127  ;;  %v1777_v10 = vld [vmem:[%s2226_s5 + $0x18] sm:$0xff]  ;;  %1028 = vmatpush.bf16.msrb.mxu0 %v1800_v29 }
  0x8c   :  { %1884 = vset.pattern.permute.xlu0 %v1986_v13  ;;  %114 = vperm.xlu2 %1878, %v95_v12  }
  0x8d   :  { %100 = vperm.xlu1 %1877, %v95_v12   ;;  %156 = vperm.xlu0 %1884, %v95_v12  }
  0x8e   :  { %375 = vmatpush.bf16.msra.mxu1 %v1777_v10  ;;  %v401_v10 = vld [vmem:[%s2221_s0 + $0x70] sm:$0xff] }
  0x94   :  { %1881 = vset.pattern.permute.xlu2 %v1987_v14 }
  0x95   :  { %1880 = vset.pattern.permute.xlu1 %v1985_v4  ;;  %1889 = vset.pattern.permute.xlu0 %v1988_v15  ;;  %v1794_v4 = vld [vmem:[#allocation2 + $0x60] sm:$0xff] }
  0x96   :  { %139 = vperm.xlu2 %1881, %v94_v9   ;;  %128 = vperm.xlu1 %1880, %v95_v12  }
  0x97   :  { %195 = vperm.xlu0 %1889, %v94_v9   ;;  %1012 = vmatpush.bf16.msra.mxu3 %v1794_v4 }
  0x9e   :  { %1883 = vset.pattern.permute.xlu2 %v1986_v13  ;;  %1882 = vset.pattern.permute.xlu1 %v1987_v14  ;;  %v1793_v13 = vld [vmem:[#allocation2 + $0x58] sm:$0xff] }
  0x9f   :  { %153 = vperm.xlu2 %1883, %v94_v9   ;;  %142 = vperm.xlu1 %1882, %v95_v12  }
  0xa0   :  { %1893 = vset.pattern.permute.xlu0 %v1983_v0  ;;  %1013 = vmatpush.bf16.msra.mxu3 %v1793_v13  ;;  %v388_v13 = vld [vmem:[%s2221_s0 + $0x8] sm:$0xff] }
  0xa1   :  { %427 = vst [vmem:[#allocation1 + $0x20] ss:$4 sm:$0xff] %v388_v13 }
  0xa4   :  { %1014 = vmatpush.bf16.msra.mxu3 %v1792_v24  ;;  %v1834_v24 = vld [vmem:[#allocation2 + $0x1a0] sm:$0xff] }
  0xa7   :  { %1886 = vset.pattern.permute.xlu2 %v1989_v16  ;;  %1885 = vset.pattern.permute.xlu1 %v1989_v16 }
  0xa8   :  { %170 = vperm.xlu2 %1886, %v95_v12   ;;  %167 = vperm.xlu1 %1885, %v94_v9  }
  0xb0   :  { %1888 = vset.pattern.permute.xlu2 %v1990_v19  ;;  %1887 = vset.pattern.permute.xlu1 %v1990_v19  ;;  %v1776_v19 = vld [vmem:[%s2226_s5 + $0x10] sm:$0xff] }
  0xb1   :  { %184 = vperm.xlu2 %1888, %v95_v12   ;;  %181 = vperm.xlu1 %1887, %v94_v9  }
  0xb2   :  { %376 = vmatpush.bf16.msra.mxu1 %v1776_v19  ;;  %v1835_v19 = vld [vmem:[#allocation2 + $0x1a8] sm:$0xff] }
  0xb6   :  { %377 = vmatpush.bf16.msra.mxu1 %v1775_v32  ;;  %v1823_v32 = vld [vmem:[#allocation2 + $0x148] sm:$0xff] }
  0xb9   :  { %1890 = vset.pattern.permute.xlu1 %v1988_v15  ;;  %1891 = vset.pattern.permute.xlu2 %v1983_v0 }
  0xba   :  { %198 = vperm.xlu1 %1890, %v95_v12   ;;  %295 = vperm.xlu2 %1891, %v1895_v22   ;;  %v1785_v12 = vld [vmem:[#allocation2 + $0x18] sm:$0xff] }
  0xbb   :  { %999 = vmatpush.bf16.msra.mxu2 %v1785_v12  ;;  %378 = vmatpush.bf16.msra.mxu1 %v1774_v40  ;;  %v1836_v12 = vld [vmem:[#allocation2 + $0x1b0] sm:$0xff]  ;;  %v400_v40 = vld [vmem:[%s2221_s0 + $0x68] sm:$0xff] }
  0xbf   :  { %1037 = vmatpush.bf16.msrb.mxu1 %v1813_v43  ;;  %v1832_v43 = vld [vmem:[#allocation2 + $0x190] sm:$0xff] }
  0xc2   :  { %1892 = vset.pattern.permute.xlu1 %v1983_v0 }
  0xc3   :  { %300 = vperm.xlu1 %1892, %v1897_v23   ;;  %v1784_v23 = vld [vmem:[#allocation2 + $0x10] sm:$0xff]  ;;  %1038 = vmatpush.bf16.msrb.mxu1 %v1812_v51 }
  0xc4   :  { %1000 = vmatpush.bf16.msra.mxu2 %v1784_v23  ;;  %v1824_v23 = vld [vmem:[#allocation2 + $0x150] sm:$0xff] }
  0xc8   :  { %1001 = vmatpush.bf16.msra.mxu2 %v1783_v33  ;;  %v1833_v33 = vld [vmem:[#allocation2 + $0x198] sm:$0xff] }
  0xcc   :  { %1002 = vmatpush.bf16.msra.mxu2 %v1782_v44  ;;  %v402_v44 = vld [vmem:[%s2221_s0 + $0x78] sm:$0xff] }
  0xd0   :  { %1051 = vmatpush.bf16.msrb.mxu2 %v1821_v47 }
  0xde   :  { %v112_v25 = vpop.permute.xlu2 %111 }
  0xdf   :  { %vm116_vm3 = vcmp.eq.s32.totalorder %v2059_v6, %v112_v25 }
  0xe0   :  { %v1368_v52 = vsel %vm116_vm3, 1.0, %v1991_v48 }
  0xe6   :  { %v115_v30 = vpop.permute.xlu2 %114 }
  0xe7   :  { %vm117_vm5 = vcmp.eq.s32.totalorder %v2059_v6, %v115_v30 }
  0xe8   :  { %v1369_v58 = vsel %vm117_vm5, 1.0, %v1991_v48 }
  0xf0   :  { %v2090_v34 = vpop.permute.xlu2 %139 }
  0xf1   :  { %vm144_vm9 = vcmp.eq.s32.totalorder %v2059_v6, %v2090_v34  ;;  %v1791_v34 = vld [vmem:[#allocation2 + $0x48] sm:$0xff] }
  0xf2   :  { %v1372_v11 = vsel %vm144_vm9, 1.0, %v1991_v48  ;;  %1015 = vmatpush.bf16.msra.mxu3 %v1791_v34  ;;  %v396_v34 = vld [vmem:[%s2221_s0 + $0x48] sm:$0xff] }
  0xf6   :  { %v126_v41 = vpop.permute.xlu0 %125 }
  0xf7   :  { %v98_v27 = vpop.permute.xlu1 %97  ;;  %vm130_vm7 = vcmp.eq.s32.totalorder %v2059_v6, %v126_v41 }
  0xf8   :  { %vm102_vm2 = vcmp.eq.s32.totalorder %v2059_v6, %v98_v27  ;;  %v1370_v0 = vsel %vm130_vm7, 1.0, %v1991_v48 }
  0xf9   :  { %v2098_v39 = vpop.permute.xlu2 %153  ;;  %v1366_v49 = vsel %vm102_vm2, 1.0, %v1991_v48  ;;  %vm1279_vm2 = vcmask 1040384  }
  0xfa   :  { %v122_v57 = vadd.f32 %v1368_v52, %v1366_v49  ;;  %vm158_vm11 = vcmp.eq.s32.totalorder %v2059_v6, %v2098_v39  ;;  %v1790_v49 = vld [vmem:[#allocation2 + $0x40] sm:$0xff]  ;;  %v1820_v52 = vld [vmem:[#allocation2 + $0x130] sm:$0xff] }
  0xfb   :  { %v1374_v20 = vsel %vm158_vm11, 1.0, %v1991_v48  ;;  %1016 = vmatpush.bf16.msra.mxu3 %v1790_v49  ;;  %1052 = vmatpush.bf16.msrb.mxu2 %v1820_v52 }
  0xfc   :  { %v136_v5 = vadd.f32 %v1370_v0, %v122_v57  ;;  %v391_v57 = vld [vmem:[%s2221_s0 + $0x20] sm:$0xff] }
  0xfd   :  { %423 = vst [vmem:[#allocation1 + $0x2] ss:$4 sm:$0xff] %v391_v57  ;;  %v1837_v0 = vld [vmem:[#allocation2 + $0x1b8] sm:$0xff] }
  0xfe   :  { %v150_v14 = vadd.f32 %v1372_v11, %v136_v5  ;;  %v1826_v11 = vld [vmem:[#allocation2 + $0x160] sm:$0xff] }
  0xff   :  { %v101_v31 = vpop.permute.xlu1 %100  ;;  %v157_v1 = vpop.permute.xlu0 %156 }
 0x100   :  { %vm103_vm4 = vcmp.eq.s32.totalorder %v2059_v6, %v101_v31  ;;  %vm159_vm10 = vcmp.eq.s32.totalorder %v2059_v6, %v157_v1  ;;  %v164_v25 = vadd.f32 %v1374_v20, %v150_v14  ;;  %v397_v1 = vld [vmem:[%s2221_s0 + $0x50] sm:$0xff]  ;;  %v394_v20 = vld [vmem:[%s2221_s0 + $0x38] sm:$0xff] }
 0x101   :  { %v1367_v53 = vsel %vm103_vm4, 1.0, %v1991_v48  ;;  %v1375_v16 = vsel %vm159_vm10, 1.0, %v1991_v48  ;;  %v1807_v14 = vld [vmem:[#allocation2 + $0xc8] sm:$0xff]  ;;  %433 = vst [vmem:[#allocation1 + $0x23] ss:$4 sm:$0xff] %v394_v20 }
 0x102   :  { %v171_v59 = vpop.permute.xlu2 %170  ;;  %v123_v62 = vadd.f32 %v1369_v58, %v1367_v53  ;;  %v1811_v53 = vld [vmem:[#allocation2 + $0xe8] sm:$0xff] }
 0x103   :  { %vm173_vm13 = vcmp.eq.s32.totalorder %v2059_v6, %v171_v59  ;;  %1039 = vmatpush.bf16.msrb.mxu1 %v1811_v53  ;;  %v393_v58 = vld [vmem:[%s2221_s0 + $0x30] sm:$0xff]  ;;  %v1809_v59 = vld [vmem:[#allocation2 + $0xd8] sm:$0xff] }
 0x104   :  { %v1377_v26 = vsel %vm173_vm13, 1.0, %v1991_v48  ;;  %425 = vst [vmem:[#allocation1 + $0x3] ss:$4 sm:$0xff] %v393_v58  ;;  %v1845_v58 = vld [vmem:[#allocation2 + $0x1f8] sm:$0xff] }
 0x108   :  { %v129_v35 = vpop.permute.xlu1 %128 }
 0x109   :  { %vm131_vm6 = vcmp.eq.s32.totalorder %v2059_v6, %v129_v35  ;;  %v196_v27 = vpop.permute.xlu0 %195 }
 0x10a   :  { %v1371_v60 = vsel %vm131_vm6, 1.0, %v1991_v48  ;;  %vm200_vm0 = vcmp.eq.s32.totalorder %v2059_v6, %v196_v27 }
 0x10b   :  { %v137_v7 = vadd.f32 %v1371_v60, %v123_v62  ;;  %v185_v21 = vpop.permute.xlu2 %184  ;;  %v1380_v41 = vsel %vm200_vm0, 1.0, %v1991_v48  ;;  %v1819_v60 = vld [vmem:[#allocation2 + $0x128] sm:$0xff]  ;;  %v1798_v62 = vld [vmem:[#allocation2 + $0x80] sm:$0xff]  ;;  %v434_v4 = vld.sshfl [vmem:[#allocation1] sm:$0xff pattern:$0x73625140] }
 0x10c   :  { %vm187_vm15 = vcmp.eq.s32.totalorder %v2059_v6, %v185_v21  ;;  %1053 = vmatpush.bf16.msrb.mxu2 %v1819_v60  ;;  %v435_v5 = vld.sshfl [vmem:[#allocation1 + $0x8] sm:$0xff pattern:$0x73625140]  ;;  %v1844_v60 = vld [vmem:[#allocation2 + $0x1f0] sm:$0xff] }
 0x10d   :  { %v1379_v36 = vsel %vm187_vm15, 1.0, %v1991_v48  ;;  %v1806_v21 = vld [vmem:[#allocation2 + $0xc0] sm:$0xff] }
 0x110   :  { %1054 = vmatpush.bf16.msrb.mxu2 %v1818_v3  ;;  %v1839_v3 = vld [vmem:[#allocation2 + $0x1c8] sm:$0xff] }
 0x111   :  { %v143_v38 = vpop.permute.xlu1 %142 }
 0x112   :  { %vm145_vm8 = vcmp.eq.s32.totalorder %v2059_v6, %v143_v38  ;;  %v1799_v38 = vld [vmem:[#allocation2 + $0x88] sm:$0xff] }
 0x113   :  { %v1373_v2 = vsel %vm145_vm8, 1.0, %v1991_v48  ;;  %1029 = vmatpush.bf16.msrb.mxu0 %v1799_v38 }
 0x114   :  { %v151_v9 = vadd.f32 %v1373_v2, %v137_v7  ;;  %v1808_v2 = vld [vmem:[#allocation2 + $0xd0] sm:$0xff]  ;;  %v436_v7 = vld.sshfl [vmem:[#allocation1 + $0x10] sm:$0xff pattern:$0x73625140]  ;;  %v296_v53 = vpop.permute.xlu2 %295 }
 0x116   :  { %v165_v18 = vadd.f32 %v1375_v16, %v151_v9  ;;  %v2179_v9 = vld.sshfl [vmem:[#allocation1 + $0x18] sm:$0xff pattern:$0x73625140]  ;;  %v1817_v16 = vld [vmem:[#allocation2 + $0x118] sm:$0xff] }
 0x117   :  { %1030 = vmatpush.bf16.msrb.mxu0 %v1798_v62  ;;  %442 = vst [vmem:[#allocation1] ss:$4 sm:$0xff] %v395_v61  ;;  %1055 = vmatpush.bf16.msrb.mxu2 %v1817_v16  ;;  %v1843_v61 = vld [vmem:[#allocation2 + $0x1e8] sm:$0xff]  ;;  %v1842_v62 = vld [vmem:[#allocation2 + $0x1e0] sm:$0xff]  ;;  %v1848_v16 = vld [vmem:[#allocation4 + $0x10] sm:$0xff] }
 0x118   :  { %v179_v31 = vadd.f32 %v1377_v26, %v165_v18  ;;  %443 = vst [vmem:[#allocation1 + $0x1] ss:$4 sm:$0xff] %v397_v1  ;;  %v1825_v18 = vld [vmem:[#allocation2 + $0x158] sm:$0xff] }
 0x119   :  { %444 = vst [vmem:[#allocation1 + $0x2] ss:$4 sm:$0xff] %v399_v8  ;;  %v1841_v1 = vld [vmem:[#allocation2 + $0x1d8] sm:$0xff] }
 0x11a   :  { %v168_v54 = vpop.permute.xlu1 %167  ;;  %v193_v39 = vadd.f32 %v1379_v36, %v179_v31  ;;  %445 = vst [vmem:[#allocation1 + $0x3] ss:$4 sm:$0xff] %v401_v10  ;;  %v398_v36 = vld [vmem:[%s2221_s0 + $0x58] sm:$0xff]  ;;  %v1853_v8 = vld [vmem:[#allocation4 + $0x38] sm:$0xff] }
 0x11b   :  { %vm172_vm12 = vcmp.eq.s32.totalorder %v2059_v6, %v168_v54  ;;  %v1810_v54 = vld [vmem:[#allocation2 + $0xe0] sm:$0xff]  ;;  %v1852_v10 = vld [vmem:[#allocation4 + $0x30] sm:$0xff] }
 0x11c   :  { %v1376_v22 = vsel %vm172_vm12, 1.0, %v1991_v48  ;;  %1040 = vmatpush.bf16.msrb.mxu1 %v1810_v54 }
 0x11d   :  { %v178_v30 = vadd.f32 %v1376_v22, %v164_v25  ;;  %v1816_v22 = vld [vmem:[#allocation2 + $0x110] sm:$0xff]  ;;  %v1815_v25 = vld [vmem:[#allocation2 + $0x108] sm:$0xff] }
 0x11e   :  { %1056 = vmatpush.bf16.msrb.mxu2 %v1816_v22  ;;  %v1847_v22 = vld [vmem:[#allocation4 + $0x8] sm:$0xff] }
 0x120   :  { %1041 = vmatpush.bf16.msrb.mxu1 %v1809_v59 }
 0x121   :  { %v450_v26 = vld.sshfl [vmem:[#allocation1] sm:$0xff pattern:$0x73625140]  ;;  %v451_v27 = vld.sshfl [vmem:[#allocation1 + $0x8] sm:$0xff pattern:$0x73625140] }
 0x122   :  { %v475_v29 = vpack.c.bf16 %v451_v27, %v435_v5  ;;  %1057 = vmatpush.bf16.msrb.mxu2 %v1815_v25  ;;  %v1846_v25 = vld [vmem:[#allocation4] sm:$0xff] }
 0x123   :  { %v182_v15 = vpop.permute.xlu1 %181 }
 0x124   :  { %vm186_vm14 = vcmp.eq.s32.totalorder %v2059_v6, %v182_v15  ;;  %1042 = vmatpush.bf16.msrb.mxu1 %v1808_v2  ;;  %v390_v15 = vld [vmem:[%s2221_s0 + $0x18] sm:$0xff]  ;;  %1017 = vmatmul.bf16.vlgmr.msra.gmra.mxu3 %v475_v29 }
 0x125   :  { %v1378_v28 = vsel %vm186_vm14, 1.0, %v1991_v48  ;;  %429 = vst [vmem:[#allocation1 + $0x21] ss:$4 sm:$0xff] %v390_v15  ;;  %v1840_v2 = vld [vmem:[#allocation2 + $0x1d0] sm:$0xff] }
 0x126   :  { %v192_v35 = vadd.f32 %v1378_v28, %v178_v30  ;;  %v474_v28 = vpack.c.bf16 %v450_v26, %v434_v4  ;;  %v452_v30 = vld.sshfl [vmem:[#allocation1 + $0x10] sm:$0xff pattern:$0x73625140]  ;;  %v1838_v4 = vld [vmem:[#allocation2 + $0x1c0] sm:$0xff] }
 0x127   :  { %v476_v31 = vpack.c.bf16 %v452_v30, %v436_v7  ;;  %v1861_v30 = vld [vmem:[#allocation6 + $0x38] sm:$0xff] }
 0x128   :  { %v206_v46 = vadd.f32 %v1380_v41, %v192_v35  ;;  %1043 = vmatpush.bf16.msrb.mxu1 %v1807_v14  ;;  %1003 = vmatmul.bf16.vlgmr.msra.gmra.mxu2 %v474_v28  ;;  %v1814_v35 = vld [vmem:[#allocation2 + $0x100] sm:$0xff]  ;;  %v1849_v14 = vld [vmem:[#allocation4 + $0x18] sm:$0xff] }
 0x129   :  { %1058 = vmatpush.bf16.msrb.mxu2 %v1814_v35 }
 0x12c   :  { %v199_v37 = vpop.permute.xlu1 %198  ;;  %1044 = vmatpush.bf16.msrb.mxu1 %v1806_v21  ;;  %v439_v38 = vld.sshfl [vmem:[#allocation1 + $0x28] sm:$0xff pattern:$0x73625140]  ;;  %v441_v41 = vld.sshfl [vmem:[#allocation1 + $0x38] sm:$0xff pattern:$0x73625140] }
 0x12d   :  { %vm201_vm1 = vcmp.eq.s32.totalorder %v2059_v6, %v199_v37  ;;  %v1829_v6 = vld [vmem:[#allocation2 + $0x178] sm:$0xff]  ;;  %1177 = vmatpush.bf16.msra.mxu2 %v1853_v8 }
 0x12e   :  { %v1381_v42 = vsel %vm201_vm1, 1.0, %v1991_v48  ;;  %1065 = vmatpush.bf16.msrb.mxu3 %v1829_v6  ;;  %v1828_v48 = vld [vmem:[#allocation2 + $0x170] sm:$0xff]  ;;  %v438_v37 = vld.sshfl [vmem:[#allocation1 + $0x20] sm:$0xff pattern:$0x73625140] }
 0x12f   :  { %v207_v45 = vadd.f32 %v1381_v42, %v193_v39  ;;  %v440_v39 = vld.sshfl [vmem:[#allocation1 + $0x30] sm:$0xff pattern:$0x73625140]  ;;  %v1822_v42 = vld [vmem:[#allocation2 + $0x140] sm:$0xff] }
 0x130   :  { %446 = vst [vmem:[#allocation1 + $0x20] ss:$4 sm:$0xff] %v396_v34 }
 0x131   :  { %v208_v50 = vpack.c.bf16 %v207_v45, %v206_v46  ;;  %447 = vst [vmem:[#allocation1 + $0x21] ss:$4 sm:$0xff] %v398_v36  ;;  %v1831_v45 = vld [vmem:[#allocation2 + $0x188] sm:$0xff]  ;;  %v1830_v46 = vld [vmem:[#allocation2 + $0x180] sm:$0xff]  ;;  %1178 = vmatpush.bf16.msra.mxu2 %v1852_v10 }
 0x132   :  { %1066 = vmatpush.bf16.msrb.mxu3 %v1828_v48  ;;  %448 = vst [vmem:[#allocation1 + $0x22] ss:$4 sm:$0xff] %v400_v40 }
 0x133   :  { %281 = vmatmul.bf16.vlgmr.msra.gmra.mxu0 %v208_v50  ;;  %449 = vst [vmem:[#allocation1 + $0x23] ss:$4 sm:$0xff] %v402_v44 }
 0x134   :  { %1079 = vmatpush.bf16.msra.mxu0 %v1837_v0 }
 0x135   :  { %v301_v54 = vpop.permute.xlu1 %300 }
 0x136   :  { %1067 = vmatpush.bf16.msrb.mxu3 %v1827_v63  ;;  %v453_v63 = vld.sshfl [vmem:[#allocation1 + $0x18] sm:$0xff pattern:$0x73625140] }
 0x137   :  { %v477_v0 = vpack.c.bf16 %v453_v63, %v2179_v9  ;;  %v1850_v9 = vld [vmem:[#allocation4 + $0x20] sm:$0xff] }
 0x138   :  { %1080 = vmatpush.bf16.msra.mxu0 %v1836_v12 }
 0x13a   :  { %1068 = vmatpush.bf16.msrb.mxu3 %v1826_v11  ;;  %v454_v49 = vld.sshfl [vmem:[#allocation1 + $0x20] sm:$0xff pattern:$0x73625140]  ;;  %v455_v50 = vld.sshfl [vmem:[#allocation1 + $0x28] sm:$0xff pattern:$0x73625140] }
 0x13b   :  { %v478_v6 = vpack.c.bf16 %v454_v49, %v438_v37  ;;  %v479_v51 = vpack.c.bf16 %v455_v50, %v439_v38  ;;  %v456_v52 = vld.sshfl [vmem:[#allocation1 + $0x30] sm:$0xff pattern:$0x73625140]  ;;  %v457_v5 = vld.sshfl [vmem:[#allocation1 + $0x38] sm:$0xff pattern:$0x73625140] }
 0x13c   :  { %1081 = vmatpush.bf16.msra.mxu0 %v1835_v19  ;;  %v480_v48 = vpack.c.bf16 %v456_v52, %v440_v39  ;;  %v481_v7 = vpack.c.bf16 %v457_v5, %v441_v41  ;;  %v1851_v11 = vld [vmem:[#allocation4 + $0x28] sm:$0xff]  ;;  %v610_v19 = vperm.slane %v2212_v17, 0 }
 0x13d   :  { %1059 = vmatmul.bf16.vlgmr.msrb.gmra.mxu2 %v478_v6  ;;  %v1859_v37 = vld [vmem:[#allocation6 + $0x28] sm:$0xff] }
 0x13e   :  { %1069 = vmatpush.bf16.msrb.mxu3 %v1825_v18  ;;  %1179 = vmatpush.bf16.msra.mxu2 %v1851_v11 }
 0x140   :  { %1082 = vmatpush.bf16.msra.mxu0 %v1834_v24 }
 0x142   :  { %1070 = vmatpush.bf16.msrb.mxu3 %v1824_v23  ;;  %1180 = vmatpush.bf16.msra.mxu2 %v1850_v9 }
 0x143   :  { %1031 = vmatmul.bf16.vlgmr.msrb.gmra.mxu0 %v476_v31 }
 0x144   :  { %1083 = vmatpush.bf16.msra.mxu0 %v1833_v33  ;;  %v1860_v33 = vld [vmem:[#allocation6 + $0x30] sm:$0xff] }
 0x146   :  { %1071 = vmatpush.bf16.msrb.mxu3 %v1823_v32  ;;  %1181 = vmatpush.bf16.msra.mxu2 %v1849_v14  ;;  %v1210_v14 = vperm.slane %v2212_v17, 3 }
 0x148   :  { %1084 = vmatpush.bf16.msra.mxu0 %v1832_v43  ;;  %v1858_v43 = vld [vmem:[#allocation6 + $0x20] sm:$0xff] }
 0x14a   :  { %1072 = vmatpush.bf16.msrb.mxu3 %v1822_v42  ;;  %1182 = vmatpush.bf16.msra.mxu2 %v1848_v16 }
 0x14c   :  { %1085 = vmatpush.bf16.msra.mxu0 %v1831_v45  ;;  %v322_v45 = vperm.slane %v2212_v17, 1 }
 0x14d   :  { %1073 = vmatmul.bf16.vlgmr.msrb.gmra.mxu3 %v479_v51 }
 0x14e   :  { %1183 = vmatpush.bf16.msra.mxu2 %v1847_v22  ;;  %1259 = vmatpush.bf16.msra.mxu3 %v1861_v30 }
 0x150   :  { %1086 = vmatpush.bf16.msra.mxu0 %v1830_v46 }
 0x152   :  { %1184 = vmatpush.bf16.msra.mxu2 %v1846_v25  ;;  %1260 = vmatpush.bf16.msra.mxu3 %v1860_v33 }
 0x153   :  { %1087 = vmatmul.bf16.vlgmr.msra.gmra.mxu0 %v480_v48 }
 0x156   :  { %1261 = vmatpush.bf16.msra.mxu3 %v1859_v37 }
 0x15a   :  { %1262 = vmatpush.bf16.msra.mxu3 %v1858_v43 }
 0x1a7   :  { %v1018_v15 = vpop.f32.mrf.mxu3 }
 0x1ab   :  { %v1004_v12 = vpop.f32.mrf.mxu2 }
 0x1ac   :  { %v1005_v23 = vadd.f32 %v1004_v12, %v610_v19 }
 0x1ae   :  { %v1019_v26 = vadd.f32 %v1018_v15, %v1005_v23 }
 0x1af   :  { %v1020_v24 = vpop.f32.mrf.mxu3 }
 0x1b0   :  { %v282_v47 = vpop.f32.mrf.mxu0 }
 0x1b1   :  { %v303_v56 = vmul.f32 %v296_v53, %v282_v47 }
 0x1b3   :  { %v1006_v21 = vpop.f32.mrf.mxu2 }
 0x1b4   :  { %v1007_v29 = vadd.f32 %v1006_v21, %v610_v19 }
 0x1b6   :  { %v1021_v34 = vadd.f32 %v1020_v24, %v1007_v29 }
 0x1b8   :  { %v284_v55 = vpop.f32.mrf.mxu0 }
 0x1b9   :  { %v304_v57 = vmul.f32 %v301_v54, %v284_v55 }
 0x1bb   :  { %v305_v59 = vpack.c.bf16 %v304_v57, %v303_v56 }
 0x1bd   :  { %379 = vmatmul.bf16.vlgmr.msra.gmra.mxu1 %v305_v59 }
 0x1be   :  { %1093 = vmatpush.bf16.msra.mxu1 %v1845_v58 }
 0x1c0   :  { %v1032_v18 = vpop.f32.mrf.mxu0  ;;  %v1060_v31 = vpop.f32.mrf.mxu2 }
 0x1c1   :  { %v1033_v32 = vadd.f32 %v1032_v18, %v1019_v26 }
 0x1c2   :  { %1094 = vmatpush.bf16.msra.mxu1 %v1844_v60 }
 0x1c6   :  { %1095 = vmatpush.bf16.msra.mxu1 %v1843_v61 }
 0x1c8   :  { %v1034_v27 = vpop.f32.mrf.mxu0  ;;  %v1062_v44 = vpop.f32.mrf.mxu2 }
 0x1c9   :  { %v1035_v39 = vadd.f32 %v1034_v27, %v1021_v34 }
 0x1ca   :  { %1096 = vmatpush.bf16.msra.mxu1 %v1842_v62 }
 0x1cd   :  { %1045 = vmatmul.bf16.vlgmr.msrb.gmra.mxu1 %v477_v0 }
 0x1ce   :  { %1097 = vmatpush.bf16.msra.mxu1 %v1841_v1  ;;  %v1857_v1 = vld [vmem:[#allocation6 + $0x18] sm:$0xff] }
 0x1cf   :  { %1263 = vmatpush.bf16.msra.mxu3 %v1857_v1 }
 0x1d0   :  { %v1074_v35 = vpop.f32.mrf.mxu3  ;;  %v1088_v40 = vpop.f32.mrf.mxu0 }
 0x1d2   :  { %1098 = vmatpush.bf16.msra.mxu1 %v1840_v2  ;;  %v1856_v2 = vld [vmem:[#allocation6 + $0x10] sm:$0xff] }
 0x1d3   :  { %1264 = vmatpush.bf16.msra.mxu3 %v1856_v2 }
 0x1d6   :  { %1099 = vmatpush.bf16.msra.mxu1 %v1839_v3  ;;  %v1855_v3 = vld [vmem:[#allocation6 + $0x8] sm:$0xff] }
 0x1d7   :  { %1265 = vmatpush.bf16.msra.mxu3 %v1855_v3 }
 0x1d8   :  { %v1076_v49 = vpop.f32.mrf.mxu3  ;;  %v1090_v53 = vpop.f32.mrf.mxu0 }
 0x1da   :  { %1100 = vmatpush.bf16.msra.mxu1 %v1838_v4  ;;  %v1854_v4 = vld [vmem:[#allocation6] sm:$0xff] }
 0x1db   :  { %1266 = vmatpush.bf16.msra.mxu3 %v1854_v4 }
 0x1dd   :  { %1101 = vmatmul.bf16.vlgmr.msra.gmra.mxu1 %v481_v7  ;;  %v1128_v7 = vperm.slane %v2212_v17, 2 }
 0x23a   :  { %v380_v13 = vpop.f32.mrf.mxu1 }
 0x23b   :  { %v381_v6 = vadd.f32 %v380_v13, %v322_v45 }
 0x23d   :  { %1898 = vtanh.f32 %v381_v6 }
 0x242   :  { %v382_v20 = vpop.f32.mrf.mxu1 }
 0x243   :  { %v383_v51 = vadd.f32 %v382_v20, %v322_v45  ;;  %v1899_v59 = vpop.eup %1898 }
 0x245   :  { %1900 = vtanh.f32 %v383_v51 }
 0x24a   :  { %v1046_v28 = vpop.f32.mrf.mxu1 }
 0x24b   :  { %v1047_v36 = vadd.f32 %v1046_v28, %v1033_v32  ;;  %v1901_v61 = vpop.eup %1900 }
 0x24d   :  { %v1061_v41 = vadd.f32 %v1060_v31, %v1047_v36 }
 0x24f   :  { %v1075_v46 = vadd.f32 %v1074_v35, %v1061_v41 }
 0x251   :  { %v1089_v52 = vadd.f32 %v1088_v40, %v1075_v46 }
 0x252   :  { %v1048_v38 = vpop.f32.mrf.mxu1 }
 0x253   :  { %v1049_v42 = vadd.f32 %v1048_v38, %v1035_v39 }
 0x255   :  { %v1063_v47 = vadd.f32 %v1062_v44, %v1049_v42 }
 0x257   :  { %v1077_v48 = vadd.f32 %v1076_v49, %v1063_v47 }
 0x259   :  { %v1091_v55 = vadd.f32 %v1090_v53, %v1077_v48 }
 0x25a   :  { %v1102_v50 = vpop.f32.mrf.mxu1 }
 0x25b   :  { %v1103_v54 = vadd.f32 %v1102_v50, %v1089_v52 }
 0x25d   :  { %v1107_v57 = vmax.f32 %v1103_v54, 0.0 }
 0x25f   :  { %v1109_v62 = vmul.f32 %v1899_v59, %v1107_v57 }
 0x262   :  { %v1104_v56 = vpop.f32.mrf.mxu1 }
 0x263   :  { %v1105_v58 = vadd.f32 %v1104_v56, %v1091_v55 }
 0x265   :  { %v1108_v60 = vmax.f32 %v1105_v58, 0.0 }
 0x267   :  { %v1110_v63 = vmul.f32 %v1901_v61, %v1108_v60 }
 0x269   :  { %v1111_v0 = vpack.c.bf16 %v1110_v63, %v1109_v62 }
 0x26b   :  { %1185 = vmatmul.bf16.vlgmr.msra.gmra.mxu2 %v1111_v0 }
 0x2ee   :  { %v1186_v5 = vpop.f32.mrf.mxu2 }
 0x2ef   :  { %v1187_v8 = vadd.f32 %v1186_v5, %v1128_v7 }
 0x2f1   :  { %v1191_v9 = vmax.f32 %v1187_v8, 0.0 }
 0x2f6   :  { %v1188_v10 = vpop.f32.mrf.mxu2 }
 0x2f7   :  { %v1189_v11 = vadd.f32 %v1188_v10, %v1128_v7 }
 0x2f9   :  { %v1192_v12 = vmax.f32 %v1189_v11, 0.0 }
 0x2fb   :  { %v1193_v13 = vpack.c.bf16 %v1192_v12, %v1191_v9 }
 0x2fd   :  { %1267 = vmatmul.bf16.vlgmr.msra.gmra.mxu3 %v1193_v13 }
 0x380   :  { %v1268_v15 = vpop.f32.mrf.mxu3 }
 0x381   :  { %v1269_v16 = vadd.f32 %v1268_v15, %v1210_v14 }
 0x383   :  { %v1273_v18 = vpack.c.bf16 %v1269_v16, %v1269_v16 }
 0x385   :  { %v1277_v19 = vrot.slane %v1273_v18, 3 }
 0x387   :  { %v1282_v20 = vsel %vm1279_vm2, %v1273_v18, %v1277_v19 }
 0x388   :  { %1315 = vst [vmem:[#allocation7] sm:$0x1] %v1282_v20  ;;  %v1270_v21 = vpop.f32.mrf.mxu3 }
 0x38f   :  { %v1341_v22 = vld [vmem:[#allocation7] sm:$0x1] }
 0x390   :  { %1342 = vst [vmem:[%s2230_s9] sm:$0x1] %v1341_v22 }
 0x391   :  { %1360 = vsyncpa [#allocation3], 1 }
 0x392   :  { %1361 = vsyncpa [#allocation5], 1 }

</bundles_post_ra>
